<compile_context>
chip_gen: v5e
topology: v5e:2x2
jax: 0.10.0
libtpu: 0.0.40
codegen_flags: <defaults>
</compile_context>

<pallas_src>
import math

import jax
import jax.numpy as jnp
from jax import lax
from jax.experimental import pallas as pl
from jax.experimental.pallas import tpu as pltpu


def _round_up(x, m):
    return ((x + m - 1) // m) * m


def _cdiv(a, b):
    return (a + b - 1) // b


def _device_kind():
    try:
        return jax.devices()[0].device_kind.lower()
    except Exception:
        return ""


_KIND = _device_kind()
_IS_V7 = "v7" in _KIND
_IS_V5_V6 = ("v5" in _KIND) or ("v6" in _KIND)

# Generation-aware budgets.  The kernels are purely HBM-bandwidth bound, so
# the only levers are block size (within each generation's VMEM) and avoiding
# extra HBM passes.
if _IS_V7:                       # 64 MiB VMEM / TC, 2 TCs, ~3.2 TB/s HBM
    _VMEM_LIMIT = 48 * 1024 * 1024
    _SSE_BM_CAP = 512
    _SSE_PARTS = 2               # split row-blocks across the two TensorCores
elif _IS_V5_V6:                  # 128 MiB VMEM, 1 TC
    _VMEM_LIMIT = 80 * 1024 * 1024
    _SSE_BM_CAP = 1024
    _SSE_PARTS = 1
else:                            # unknown / older part: stay conservative
    _VMEM_LIMIT = 32 * 1024 * 1024
    _SSE_BM_CAP = 256
    _SSE_PARTS = 1

_SSE_BLOCK_BUDGET = _VMEM_LIMIT - 16 * 1024 * 1024   # headroom for outputs etc.
_LOG_TARGET_BLOCK_BYTES = 2 * 1024 * 1024            # per-tensor log-sum block
_LOG_VMEM_LIMIT = min(_VMEM_LIMIT, 32 * 1024 * 1024)


def _choose_lanes(n):
    for cand in (2048, 1024, 512, 256, 128):
        if n % cand == 0:
            return cand
    return 128   # caller pads (rare: only when n % 128 != 0)


# ----------------------------------------------------------------------------
# Kernel 1: per-recon-row sum of squared errors.
#   x3d : (R, M, L) reconstructions; t2d : (M, L) target (broadcast over R).
# Grid (P, NBP): P parts ("parallel", cross-TC only on v7x) x row-blocks
# ("arbitrary").  Accumulator is (1, R, L); each block is sublane-reduced
# before accumulation so the accumulator traffic is negligible.
# ----------------------------------------------------------------------------
def sse_rows(x3d, t2d):
    R, M, L = x3d.shape
    assert t2d.shape == (M, L)

    xb = jnp.dtype(x3d.dtype).itemsize
    tb = jnp.dtype(t2d.dtype).itemsize

    # Dtype-aware block-row choice: double-buffered x + t blocks fit the budget.
    per_row = 2 * L * (R * xb + tb)
    bm_budget = max(8, (_SSE_BLOCK_BUDGET // per_row) // 8 * 8)
    BM = min(_SSE_BM_CAP, bm_budget)
    if BM >= M:
        BM = M                       # full-extent block is always legal
    NB = _cdiv(M, BM)                # total row blocks
    P = max(1, min(_SSE_PARTS, NB))  # never more parts than blocks
    NBP = _cdiv(NB, P)               # row blocks per part
    ragged = (NB * BM != M)

    def kernel(x_ref, t_ref, o_ref, acc_ref):
        p = pl.program_id(0)
        j = pl.program_id(1)

        @pl.when(j == 0)
        def _():
            acc_ref[...] = jnp.zeros_like(acc_ref)

        lin = p * NBP + j            # linear row-block id

        def add_block(mask_rows):
            x = x_ref[...].astype(jnp.float32)           # (R, BM, L)
            t = t_ref[...].astype(jnp.float32)           # (BM, L)
            d = x - t[None, :, :]
            sq = d * d
            if mask_rows:            # only traced for the last (ragged) block
                grow = (NB - 1) * BM + lax.broadcasted_iota(
                    jnp.int32, (BM, L), 0)
                sq = jnp.where((grow < M)[None, :, :], sq, 0.0)
            # Sublane-reduce before accumulating: acc is only (1, R, L).
            acc_ref[...] += jnp.sum(sq, axis=1)[None]

        if ragged:
            if NB > 1:
                pl.when(lin < NB - 1)(lambda: add_block(False))
            pl.when(lin == NB - 1)(lambda: add_block(True))
        else:
            pl.when(lin < NB)(lambda: add_block(False))

        @pl.when(j == NBP - 1)
        def _():
            o_ref[...] = acc_ref[...]          # (1, R, L) partial per part

    out = pl.pallas_call(
        kernel,
        out_shape=jax.ShapeDtypeStruct((P, R, L), jnp.float32),
        grid_spec=pltpu.PrefetchScalarGridSpec(
            num_scalar_prefetch=0,
            grid=(P, NBP),
            in_specs=[
                pl.BlockSpec(
                    (R, BM, L),
                    lambda p, j: (0, jnp.minimum(p * NBP + j, NB - 1), 0)),
                pl.BlockSpec(
                    (BM, L),
                    lambda p, j: (jnp.minimum(p * NBP + j, NB - 1), 0)),
            ],
            out_specs=pl.BlockSpec((1, R, L), lambda p, j: (p, 0, 0)),
            scratch_shapes=[pltpu.VMEM((1, R, L), jnp.float32)],
        ),
        # TODO(synk): consider pltpu.CORE_PARALLEL on the P axis for v7x.
        compiler_params=pltpu.CompilerParams(
            dimension_semantics=("parallel", "arbitrary"),
            vmem_limit_bytes=_VMEM_LIMIT),
    )(x3d, t2d)
    return jnp.sum(out, axis=(0, 2))   # (R,) per-recon-row SSE


# ----------------------------------------------------------------------------
# Kernel 2: fused sum(log(x)) over several likelihood tensors, one launch.
# Each tensor is a separate kernel input with its own free (rows_i, L_i) view,
# its own block shape and its own (1, L_i) accumulator — no wrapper-side
# pad/concat HBM pass, no clamped re-DMA loops for the small z tensors.
# ----------------------------------------------------------------------------
def fused_sum_log(tensors):
    """Returns (len(tensors),) f32 sums of log(x)."""
    S = len(tensors)

    views, base_meta = [], []
    for a in tensors:
        n = int(a.size)
        L = _choose_lanes(n)
        flat = a.reshape(-1)
        if n % L:
            # TODO(synk): rare (size not a multiple of 128) — pad this tensor
            # only with 1.0 (log(1)=0 keeps the sum exact).
            flat = jnp.pad(flat, (0, _round_up(n, L) - n), constant_values=1.0)
        rows = flat.shape[0] // L
        views.append(flat.reshape(rows, L))
        base_meta.append((rows, L))

    NG = max(1, max(
        _cdiv(rows * L * jnp.dtype(v.dtype).itemsize, _LOG_TARGET_BLOCK_BYTES)
        for (rows, L), v in zip(base_meta, views)))

    metas = []   # (rows, L, bm, nb, ragged)
    for rows, L in base_meta:
        bm = _round_up(_cdiv(rows, NG), 8)
        if bm >= rows:
            bm = rows
        nb = _cdiv(rows, bm)
        metas.append((rows, L, bm, nb, nb * bm != rows))

    def kernel(*refs):
        x_refs = refs[:S]
        o_refs = refs[S:2 * S]
        a_refs = refs[2 * S:]
        j = pl.program_id(0)

        @pl.when(j == 0)
        def _():
            for a in a_refs:
                a[...] = jnp.zeros_like(a)

        for s in range(S):
            rows, L, bm, nb, ragged = metas[s]
            x_ref, a_ref = x_refs[s], a_refs[s]

            def add(masked, x_ref=x_ref, a_ref=a_ref,
                    rows=rows, L=L, bm=bm, nb=nb):
                lg = jnp.log(x_ref[...].astype(jnp.float32))      # (bm, L)
                if masked:           # only traced for the last (ragged) block
                    grow = (nb - 1) * bm + lax.broadcasted_iota(
                        jnp.int32, (bm, L), 0)
                    lg = jnp.where(grow < rows, lg, 0.0)
                a_ref[...] += jnp.sum(lg, axis=0, keepdims=True)  # (1, L)

            if ragged:
                if nb > 1:
                    pl.when(j < nb - 1)(lambda add=add: add(False))
                pl.when(j == nb - 1)(lambda add=add: add(True))
            elif nb == NG:
                add(False)
            else:
                pl.when(j < nb)(lambda add=add: add(False))

        @pl.when(j == NG - 1)
        def _():
            for o, a in zip(o_refs, a_refs):
                o[...] = a[...]

    in_specs = [
        pl.BlockSpec((bm, L), lambda j, nb=nb: (jnp.minimum(j, nb - 1), 0))
        for (rows, L, bm, nb, ragged) in metas]
    out_specs = [pl.BlockSpec((1, m[1]), lambda j: (0, 0)) for m in metas]
    out_shape = tuple(jax.ShapeDtypeStruct((1, m[1]), jnp.float32)
                      for m in metas)
    scratch = [pltpu.VMEM((1, m[1]), jnp.float32) for m in metas]

    outs = pl.pallas_call(
        kernel,
        out_shape=out_shape,
        grid_spec=pltpu.PrefetchScalarGridSpec(
            num_scalar_prefetch=0,
            grid=(NG,),
            in_specs=in_specs,
            out_specs=out_specs,
            scratch_shapes=scratch,
        ),
        compiler_params=pltpu.CompilerParams(
            dimension_semantics=("arbitrary",),
            vmem_limit_bytes=_LOG_VMEM_LIMIT),
    )(*views)
    return jnp.stack([jnp.sum(o) for o in outs])   # (S,)


# ----------------------------------------------------------------------------
# Wrapper reproducing ScalableRateDistortionLoss.forward
# ----------------------------------------------------------------------------
def scalable_rate_distortion_loss(output, target, lmbda=None,
                                  weight=255 ** 2, lmbda_list=(0.75,)):
    x_hat = output['x_hat']                       # (R, B, C, H, W)
    B, C, H, W = target.shape
    R = x_hat.shape[0]
    num_pixels = B * H * W
    denominator = -math.log(2.0) * num_pixels
    N = B * C * H * W

    if lmbda is None:
        lmbda_v = jnp.asarray(lmbda_list, dtype=jnp.float32)
    else:
        lmbda_v = jnp.asarray(lmbda, dtype=jnp.float32)

    # ---- mse_loss: per-recon-row mean of squared error ---------------------
    L = _choose_lanes(N)
    xh = x_hat.reshape(R, N)                      # free reshape (no copy)
    tg = target.reshape(N)
    if N % L:
        # TODO(synk): mask the ragged lane tail in-kernel instead of this rare
        # full-tensor pad copy (only triggers when N % 128 != 0).
        Np = _round_up(N, L)
        xh = jnp.pad(xh, ((0, 0), (0, Np - N)))
        tg = jnp.pad(tg, (0, Np - N))
    else:
        Np = N
    M = Np // L
    sse = sse_rows(xh.reshape(R, M, L), tg.reshape(M, L))   # (R,)
    mse = sse / float(N)

    # ---- bpp terms: one fused kernel over the 4 likelihood tensors ---------
    lik = output['likelihoods']
    seg = fused_sum_log([lik['z'], lik['y'], lik['z_prog'], lik['y_prog']])

    out = {}
    out['mse_loss'] = mse
    out['bpp_hype_base'] = seg[0] / denominator
    out['bpp_main_base'] = seg[1] / denominator
    out['bpp_base'] = out['bpp_main_base'] + out['bpp_hype_base']
    out['bpp_hype_scale'] = seg[2] / denominator
    out['bpp_main_scale'] = seg[3] / denominator
    out['bpp_scalable'] = out['bpp_main_scale'] + out['bpp_hype_scale']
    out['bpp_loss'] = out['bpp_scalable'] + R * out['bpp_base']
    out['loss'] = out['bpp_loss'] + weight * jnp.mean(lmbda_v * mse)
    return out


# ----------------------------------------------------------------------------
# Pure-JAX reference (for sanity check)
# ----------------------------------------------------------------------------
def _reference(output, target, weight=255 ** 2, lmbda_list=(0.75,)):
    x_hat = output['x_hat']
    B, C, H, W = target.shape
    R = x_hat.shape[0]
    num_pixels = B * H * W
    denom = -math.log(2.0) * num_pixels
    ext = jnp.broadcast_to(target[None], x_hat.shape)
    mse = jnp.mean((ext - x_hat) ** 2, axis=(1, 2, 3, 4))
    lik = output['likelihoods']
    bhb = jnp.sum(jnp.log(lik['z'])) / denom
    bmb = jnp.sum(jnp.log(lik['y'])) / denom
    bhs = jnp.sum(jnp.log(lik['z_prog'])) / denom
    bms = jnp.sum(jnp.log(lik['y_prog'])) / denom
    bpp = (bms + bhs) + R * (bmb + bhb)
    lm = jnp.asarray(lmbda_list, dtype=jnp.float32)
    loss = bpp + weight * jnp.mean(lm * mse)
    return mse, bpp, loss


if __name__ == "__main__":
    key = jax.random.PRNGKey(0)
    k1, k2, k3, k4, k5, k6 = jax.random.split(key, 6)

    B, C, H, W = 2, 3, 16, 16          # image batch (NCHW, like PyTorch)
    R = 2                              # batch_size_recon (scalable recon levels)

    target = jax.random.uniform(k1, (B, C, H, W), dtype=jnp.float32)
    x_hat = jax.random.uniform(k2, (R, B, C, H, W), dtype=jnp.float32)

    def _lik(k, shape):
        return jax.random.uniform(k, shape, dtype=jnp.float32,
                                  minval=0.05, maxval=1.0)

    output = {
        'x_hat': x_hat,
        'likelihoods': {
            'y':      _lik(k3, (R, 8, H // 4, W // 4)),
            'z':      _lik(k4, (R, 4, H // 8, W // 8)),
            'y_prog': _lik(k5, (R, 8, H // 4, W // 4)),
            'z_prog': _lik(k6, (R, 4, H // 8, W // 8)),
        },
    }

    out = scalable_rate_distortion_loss(output, target)
    jax.block_until_ready(out['loss'])

    ref_mse, ref_bpp, ref_loss = _reference(output, target)
    assert jnp.allclose(out['mse_loss'], ref_mse, rtol=1e-4, atol=1e-5), \
        (out['mse_loss'], ref_mse)
    assert jnp.allclose(out['bpp_loss'], ref_bpp, rtol=1e-4, atol=1e-5), \
        (out['bpp_loss'], ref_bpp)
    assert jnp.allclose(out['loss'], ref_loss, rtol=1e-4, atol=1e-4), \
        (out['loss'], ref_loss)

    print("KERNEL_OK")
</pallas_src>

<mosaic_0001>
module attributes {stable_mosaic.version = 11 : i64} {
  func.func @kernel(%arg0: i32, %arg1: i32, %arg2: memref<2x3x512xf32, #tpu.memory_space<vmem>>, %arg3: memref<3x512xf32, #tpu.memory_space<vmem>>, %arg4: memref<1x2x512xf32, #tpu.memory_space<vmem>>, %arg5: memref<1x2x512xf32, #tpu.memory_space<vmem>>) attributes {dimension_semantics = [#tpu.dimension_semantics<parallel>, #tpu.dimension_semantics<arbitrary>], iteration_bounds = array<i64: 1, 1>, scalar_prefetch = 0 : i64, scratch_operands = 1 : i64, tpu.core_type = #tpu.core_type<tc>, window_params = [{transform_indices = @transform_0, window_bounds = array<i64: 2, 3, 512>}, {transform_indices = @transform_1, window_bounds = array<i64: 3, 512>}, {transform_indices = @transform_2, window_bounds = array<i64: 1, 2, 512>}]} {
    %c0_i32 = arith.constant 0 : i32
    %0 = arith.cmpi eq, %arg1, %c0_i32 : i32
    %1 = arith.extui %0 : i1 to i32
    %c0_i32_0 = arith.constant 0 : i32
    %2 = arith.cmpi ne, %1, %c0_i32_0 : i32
    scf.if %2 {
      %cst = arith.constant 0.000000e+00 : f32
      %11 = vector.broadcast %cst : f32 to vector<1x2x512xf32>
      %c0 = arith.constant 0 : index
      %c0_5 = arith.constant 0 : index
      %c0_6 = arith.constant 0 : index
      %12 = vector.load %arg5[%c0, %c0_5, %c0_6] : memref<1x2x512xf32, #tpu.memory_space<vmem>>, vector<1x2x512xf32>
      tpu.vector_store %arg5[%c0, %c0_5, %c0_6], %11 {strides = array<i32>} : memref<1x2x512xf32, #tpu.memory_space<vmem>>, vector<1x2x512xf32>,
    } else {
    }
    %c1_i32 = arith.constant 1 : i32
    %3 = arith.muli %arg0, %c1_i32 : i32
    %4 = arith.addi %3, %arg1 : i32
    %c1_i32_1 = arith.constant 1 : i32
    %5 = arith.cmpi slt, %4, %c1_i32_1 : i32
    %6 = arith.extui %5 : i1 to i32
    %c0_i32_2 = arith.constant 0 : i32
    %7 = arith.cmpi ne, %6, %c0_i32_2 : i32
    scf.if %7 {
      %c0 = arith.constant 0 : index
      %c0_5 = arith.constant 0 : index
      %c0_6 = arith.constant 0 : index
      %11 = vector.load %arg2[%c0, %c0_5, %c0_6] : memref<2x3x512xf32, #tpu.memory_space<vmem>>, vector<2x3x512xf32>
      %c0_7 = arith.constant 0 : index
      %c0_8 = arith.constant 0 : index
      %12 = vector.load %arg3[%c0_7, %c0_8] : memref<3x512xf32, #tpu.memory_space<vmem>>, vector<3x512xf32>
      %13 = vector.shape_cast %12 : vector<3x512xf32> to vector<1x3x512xf32>
      %14 = vector.broadcast %13 : vector<1x3x512xf32> to vector<2x3x512xf32>
      %15 = arith.subf %11, %14 : vector<2x3x512xf32>
      %16 = arith.mulf %15, %15 : vector<2x3x512xf32>
      %c0_9 = arith.constant 0 : index
      %c0_10 = arith.constant 0 : index
      %c0_11 = arith.constant 0 : index
      %17 = vector.load %arg5[%c0_9, %c0_10, %c0_11] : memref<1x2x512xf32, #tpu.memory_space<vmem>>, vector<1x2x512xf32>
      %cst = arith.constant dense<0.000000e+00> : vector<2x512xf32>
      %18 = vector.multi_reduction <add>, %16, %cst [1] : vector<2x3x512xf32> to vector<2x512xf32>
      %19 = vector.shape_cast %18 : vector<2x512xf32> to vector<1x2x512xf32>
      %20 = arith.addf %17, %19 : vector<1x2x512xf32>
      %c0_12 = arith.constant 0 : index
      %c0_13 = arith.constant 0 : index
      %c0_14 = arith.constant 0 : index
      %21 = vector.load %arg5[%c0_12, %c0_13, %c0_14] : memref<1x2x512xf32, #tpu.memory_space<vmem>>, vector<1x2x512xf32>
      tpu.vector_store %arg5[%c0_12, %c0_13, %c0_14], %20 {strides = array<i32>} : memref<1x2x512xf32, #tpu.memory_space<vmem>>, vector<1x2x512xf32>,
    } else {
    }
    %c0_i32_3 = arith.constant 0 : i32
    %8 = arith.cmpi eq, %arg1, %c0_i32_3 : i32
    %9 = arith.extui %8 : i1 to i32
    %c0_i32_4 = arith.constant 0 : i32
    %10 = arith.cmpi ne, %9, %c0_i32_4 : i32
    scf.if %10 {
      %c0 = arith.constant 0 : index
      %c0_5 = arith.constant 0 : index
      %c0_6 = arith.constant 0 : index
      %11 = vector.load %arg5[%c0, %c0_5, %c0_6] : memref<1x2x512xf32, #tpu.memory_space<vmem>>, vector<1x2x512xf32>
      %c0_7 = arith.constant 0 : index
      %c0_8 = arith.constant 0 : index
      %c0_9 = arith.constant 0 : index
      %12 = vector.load %arg4[%c0_7, %c0_8, %c0_9] : memref<1x2x512xf32, #tpu.memory_space<vmem>>, vector<1x2x512xf32>
      tpu.vector_store %arg4[%c0_7, %c0_8, %c0_9], %11 {strides = array<i32>} : memref<1x2x512xf32, #tpu.memory_space<vmem>>, vector<1x2x512xf32>,
    } else {
    }
    return
  }
  func.func @transform_0(%arg0: i32, %arg1: i32) -> (i32, i32, i32) {
    %c1_i32 = arith.constant 1 : i32
    %0 = arith.muli %arg0, %c1_i32 : i32
    %1 = arith.addi %0, %arg1 : i32
    %c0_i32 = arith.constant 0 : i32
    %2 = arith.minsi %1, %c0_i32 : i32
    %c0_i32_0 = arith.constant 0 : i32
    %c0_i32_1 = arith.constant 0 : i32
    %c0_i32_2 = arith.constant 0 : i32
    return %c0_i32_0, %2, %c0_i32_1 : i32, i32, i32
  }
  func.func @transform_1(%arg0: i32, %arg1: i32) -> (i32, i32) {
    %c1_i32 = arith.constant 1 : i32
    %0 = arith.muli %arg0, %c1_i32 : i32
    %1 = arith.addi %0, %arg1 : i32
    %c0_i32 = arith.constant 0 : i32
    %2 = arith.minsi %1, %c0_i32 : i32
    %c0_i32_0 = arith.constant 0 : i32
    %c0_i32_1 = arith.constant 0 : i32
    return %2, %c0_i32_0 : i32, i32
  }
  func.func @transform_2(%arg0: i32, %arg1: i32) -> (i32, i32, i32) {
    %c0_i32 = arith.constant 0 : i32
    %c0_i32_0 = arith.constant 0 : i32
    %c0_i32_1 = arith.constant 0 : i32
    return %arg0, %c0_i32, %c0_i32_0 : i32, i32, i32
  }
}

</mosaic_0001>

<bundles_post_ra>
// kernel: tpu_custom_call.1
= control target key start
LH: loop header
LB: loop body
LE: loop exit
PB: predicated region body
PF: predicated region fallthrough
CT: control target
= control target key end

     0   :  { %s325_s0 = inlined_call_operand.vmem [shape: f32[2,3,512], index: 0, kind: input, shape index: {}]   ;;  %s326_s1 = inlined_call_operand.vmem [shape: f32[3,512], index: 1, kind: input, shape index: {}]   ;;  %s327_s2 = inlined_call_operand.hbm [shape: f32[1,2,512], index: 2, kind: output, shape index: {}]  }
   0x1   :  { %v82_v0 = vld [vmem:[%s325_s0] sm:$0x77]  ;;  %v83_v2 = vld [vmem:[%s325_s0 + $0x8] sm:$0x77]  ;;  %v84_v5 = vld [vmem:[%s325_s0 + $0x10] sm:$0x77] }
   0x2   :  { %v86_v1 = vld [vmem:[%s326_s1] sm:$0x77]  ;;  %v87_v4 = vld [vmem:[%s326_s1 + $0x8] sm:$0x77]  ;;  %v85_v6 = vld [vmem:[%s325_s0 + $0x18] sm:$0x77] }
   0x3   :  { %v88_v3 = vsub.f32 %v82_v0, %v86_v1  ;;  %v89_v7 = vsub.f32 %v83_v2, %v87_v4  ;;  %v90_v8 = vsub.f32 %v84_v5, %v86_v1  ;;  %v91_v9 = vsub.f32 %v85_v6, %v87_v4 }
   0x4   :  { %7 = vsyncpa [#allocation4], 0  ;;  %vm124_vm0 = vcmask 1042432   ;;  %vm195_vm1 = vcmask 1041408   ;;  %vm197_vm2 = vcmask 1045508   ;;  %vm199_vm3 = vcmask 1043456  }
   0x5   :  { %v92_v10 = vmul.f32 %v88_v3, %v88_v3  ;;  %v93_v11 = vmul.f32 %v89_v7, %v89_v7  ;;  %v94_v12 = vmul.f32 %v90_v8, %v90_v8  ;;  %v95_v13 = vmul.f32 %v91_v9, %v91_v9  ;;  %s280_s0 = smov [#allocation3]   ;;  %s232_s23 = sshll.u32 %s327_s2, 4  ;;  %s233_s23 = int_to_ptr.hbm [resolvable:$true] %s232_s23 }
   0x6   :  { %vm209_vm4 = vcmask 1041409   ;;  %vm211_vm5 = vcmask 1043459   ;;  %vm213_vm6 = vcmask 1045509   ;;  %s230_s1 = sshll.u32 %s280_s0, 4  ;;  %vm215_vm7 = vcmask 1047559   ;;  %s231_s1 = int_to_ptr.vmem [resolvable:$true] %s230_s1 }
   0x7   :  { %101 = vst [vmem:[#allocation1] ss:$2 sm:$0xff] %v92_v10 }
   0x8   :  { %103 = vst [vmem:[#allocation1 + $0x10] ss:$2 sm:$0xff] %v93_v11 }
   0x9   :  { %109 = vst [vmem:[#allocation1 + $0x20] ss:$2 sm:$0xff] %v94_v12 }
   0xa   :  { %111 = vst [vmem:[#allocation1 + $0x30] ss:$2 sm:$0xff] %v95_v13 }
   0xe   :  { %v104_v14 = vld.sshfl [vmem:[#allocation1] sm:$0xff pattern:$0x75316420]  ;;  %v105_v15 = vld.sshfl [vmem:[#allocation1 + $0x8] sm:$0xff pattern:$0x75316420] }
   0xf   :  { %v106_v16 = vld.sshfl [vmem:[#allocation1 + $0x10] sm:$0xff pattern:$0x75316420]  ;;  %v107_v17 = vld.sshfl [vmem:[#allocation1 + $0x18] sm:$0xff pattern:$0x75316420] }
  0x10   :  { %v112_v18 = vld.sshfl [vmem:[#allocation1 + $0x20] sm:$0xff pattern:$0x75316420]  ;;  %v113_v19 = vld.sshfl [vmem:[#allocation1 + $0x28] sm:$0xff pattern:$0x75316420] }
  0x11   :  { %v114_v20 = vld.sshfl [vmem:[#allocation1 + $0x30] sm:$0xff pattern:$0x75316420]  ;;  %v115_v21 = vld.sshfl [vmem:[#allocation1 + $0x38] sm:$0xff pattern:$0x75316420] }
  0x12   :  { %v125_v22 = vsel %vm124_vm0, %v104_v14, 0.0  ;;  %v132_v23 = vsel %vm124_vm0, %v105_v15, 0.0  ;;  %v139_v24 = vsel %vm124_vm0, %v106_v16, 0.0  ;;  %v146_v25 = vsel %vm124_vm0, %v107_v17, 0.0 }
  0x13   :  { %v126_v26 = vrot.slane %v125_v22, 4  ;;  %v133_v27 = vrot.slane %v132_v23, 4  ;;  %v140_v28 = vrot.slane %v139_v24, 4  ;;  %v147_v29 = vrot.slane %v146_v25, 4 }
  0x14   :  { %v153_v30 = vsel %vm124_vm0, %v112_v18, 0.0  ;;  %v160_v31 = vsel %vm124_vm0, %v113_v19, 0.0  ;;  %v167_v32 = vsel %vm124_vm0, %v114_v20, 0.0  ;;  %v174_v33 = vsel %vm124_vm0, %v115_v21, 0.0 }
  0x15   :  { %v127_v34 = vadd.f32 %v126_v26, %v125_v22  ;;  %v134_v35 = vadd.f32 %v133_v27, %v132_v23  ;;  %v141_v36 = vadd.f32 %v140_v28, %v139_v24  ;;  %v148_v37 = vadd.f32 %v147_v29, %v146_v25 }
  0x16   :  { %v154_v38 = vrot.slane %v153_v30, 4  ;;  %v161_v39 = vrot.slane %v160_v31, 4  ;;  %v168_v40 = vrot.slane %v167_v32, 4  ;;  %v175_v41 = vrot.slane %v174_v33, 4 }
  0x17   :  { %v128_v42 = vrot.slane %v127_v34, 2  ;;  %v135_v43 = vrot.slane %v134_v35, 2  ;;  %v142_v44 = vrot.slane %v141_v36, 2  ;;  %v149_v45 = vrot.slane %v148_v37, 2 }
  0x18   :  { %v155_v46 = vadd.f32 %v154_v38, %v153_v30  ;;  %v162_v47 = vadd.f32 %v161_v39, %v160_v31  ;;  %v169_v48 = vadd.f32 %v168_v40, %v167_v32  ;;  %v176_v49 = vadd.f32 %v175_v41, %v174_v33 }
  0x19   :  { %v129_v50 = vadd.f32 %v128_v42, %v127_v34  ;;  %v136_v51 = vadd.f32 %v135_v43, %v134_v35  ;;  %v143_v52 = vadd.f32 %v142_v44, %v141_v36  ;;  %v150_v53 = vadd.f32 %v149_v45, %v148_v37 }
  0x1a   :  { %v156_v54 = vrot.slane %v155_v46, 2  ;;  %v163_v55 = vrot.slane %v162_v47, 2  ;;  %v170_v56 = vrot.slane %v169_v48, 2  ;;  %v177_v57 = vrot.slane %v176_v49, 2 }
  0x1b   :  { %v137_v58 = vrot.slane %v136_v51, 1  ;;  %v144_v59 = vrot.slane %v143_v52, 1  ;;  %v151_v60 = vrot.slane %v150_v53, 1  ;;  %v130_v1 = vrot.slane %v129_v50, 1 }
  0x1c   :  { %v157_v61 = vadd.f32 %v156_v54, %v155_v46  ;;  %v164_v62 = vadd.f32 %v163_v55, %v162_v47  ;;  %v171_v63 = vadd.f32 %v170_v56, %v169_v48  ;;  %v178_v0 = vadd.f32 %v177_v57, %v176_v49 }
  0x1d   :  { %v138_v2 = vadd.f32 %v137_v58, %v136_v51  ;;  %v145_v3 = vadd.f32 %v144_v59, %v143_v52  ;;  %v152_v4 = vadd.f32 %v151_v60, %v150_v53  ;;  %v131_v15 = vadd.f32 %v130_v1, %v129_v50 }
  0x1e   :  { %v158_v5 = vrot.slane %v157_v61, 1  ;;  %v165_v6 = vrot.slane %v164_v62, 1  ;;  %v172_v7 = vrot.slane %v171_v63, 1  ;;  %v179_v8 = vrot.slane %v178_v0, 1 }
  0x1f   :  { %v189_v9 = vrot.slane %v138_v2, 6  ;;  %v190_v10 = vrot.slane %v145_v3, 4  ;;  %v191_v14 = vrot.slane %v152_v4, 2 }
  0x20   :  { %v166_v11 = vadd.f32 %v165_v6, %v164_v62  ;;  %v173_v12 = vadd.f32 %v172_v7, %v171_v63  ;;  %v180_v13 = vadd.f32 %v179_v8, %v178_v0  ;;  %v159_v16 = vadd.f32 %v158_v5, %v157_v61 }
  0x21   :  { %v196_v20 = vsel %vm195_vm1, %v131_v15, %v189_v9  ;;  %v198_v21 = vsel %vm197_vm2, %v190_v10, %v191_v14 }
  0x22   :  { %v192_v17 = vrot.slane %v166_v11, 6  ;;  %v193_v18 = vrot.slane %v173_v12, 4  ;;  %v194_v19 = vrot.slane %v180_v13, 2  ;;  %v200_v26 = vsel %vm199_vm3, %v196_v20, %v198_v21 }
  0x24   :  { %v201_v22 = vsel %vm195_vm1, %v159_v16, %v192_v17  ;;  %v202_v23 = vsel %vm197_vm2, %v193_v18, %v194_v19 }
  0x25   :  { %v203_v24 = vsel %vm199_vm3, %v201_v22, %v202_v23 }
  0x26   :  { %v208_v25 = vrot.slane %v203_v24, 7 }
  0x28   :  { %v210_v27 = vsel %vm209_vm4, %v208_v25, %v200_v26 }
  0x29   :  { %v212_v28 = vsel %vm211_vm5, %v208_v25, %v210_v27 }
  0x2a   :  { %v214_v29 = vsel %vm213_vm6, %v208_v25, %v212_v28 }
  0x2b   :  { %v216_v30 = vsel %vm215_vm7, %v208_v25, %v214_v29 }
  0x2c   :  { %224 = vst [vmem:[#allocation3] sm:$0xff] %v216_v30 }
  0x2d   :  { %235 = dma.vmem_to_hbm [thread:$0]  %s231_s1, 128, %s233_s23, [#allocation4]  }
  0x2e   :  { %278 = dma.done.wait [#allocation4], 128  }
  0x2f   :  { %279 = vsyncadd [#allocation4], 4294967168 }
  0x30   :  { %240 = vsyncpa [#allocation4], 1 }

</bundles_post_ra>
